<compile_context>
chip_gen: v7x
topology: tpu7x:2x2x1
jax: 0.10.0
libtpu: 0.0.40
codegen_flags: <defaults>
</compile_context>

<pallas_src>
import numpy as np
import jax
import jax.numpy as jnp
from jax import lax
from jax.experimental import pallas as pl
from jax.experimental.pallas import tpu as pltpu


# ----------------------------- fused Pallas kernel -----------------------------

def _make_fused_align_kernel(H, W, hh, wh, Cin, Cout):
    HW = H * W
    HWi = hh * wh
    C2 = 2 * Cout
    inv_w = 1.0 / W          # Python float scalars -> no captured array constants
    inv_h = 1.0 / H

    def kernel(low_ref, high_ref, wdl_ref, wdh_ref, rT_ref, wflow_ref,
               mask_ref, base_ref, src_ref, o_ref):
        low = low_ref[0]                       # (Cin, HW)   low-level feature
        high = high_ref[0]                     # (Cin, HWi)  ORIGINAL h_feature

        # ---- down_l / down_h : 1x1 convs == channel matmuls (lane-dense out) ----
        low_d = jnp.dot(wdl_ref[...], low, preferred_element_type=jnp.float32)    # (Cout, HW)
        high_d = jnp.dot(wdh_ref[...], high, preferred_element_type=jnp.float32)  # (Cout, HWi)

        # ---- bilinear upsample (align_corners=False) via static sampling matrix ----
        # TODO(synk): at real segmentation resolutions replace the dense R^T with a
        # separable height-then-width pair of matmuls to bound VMEM / FLOPs.
        high_up = jnp.dot(high_d, rT_ref[...], preferred_element_type=jnp.float32)  # (Cout, HW)

        # ---- flow_make : 3x3 conv (pad=1, no bias) as ONE im2col matmul ----------
        cat = jnp.concatenate([high_up, low_d], axis=0)        # (C2, HW)
        masks = mask_ref[...]                                   # (9, HW) border validity
        taps = []
        k = 0
        for dh in (-1, 0, 1):
            for dw in (-1, 0, 1):
                s = dh * W + dw                                  # flat source offset
                rolled = cat if s == 0 else pltpu.roll(cat, (-s) % HW, axis=1)
                taps.append(rolled * masks[k:k + 1, :])          # zero-pad borders
                k += 1
        taps = jnp.concatenate(taps, axis=0)                     # (9*C2, HW)
        flow = jnp.dot(wflow_ref[...], taps, preferred_element_type=jnp.float32)  # (2, HW)

        # ---- flow_warp : grid_sample(bilinear, zeros, align_corners=False) ------
        base = base_ref[...]                                     # (2, HW): gx, gy in [-1,1]
        cx = base[0:1, :] + flow[0:1, :] * inv_w                 # (1, HW)
        cy = base[1:2, :] + flow[1:2, :] * inv_h
        ix = (cx * wh + (wh - 1)) * 0.5                          # unnormalize (a_c=False)
        iy = (cy * hh + (hh - 1)) * 0.5
        x0f = jnp.floor(ix)
        y0f = jnp.floor(iy)
        wx1 = ix - x0f
        wx0 = 1.0 - wx1
        wy1 = iy - y0f
        wy0 = 1.0 - wy1
        x0 = x0f.astype(jnp.int32)
        y0 = y0f.astype(jnp.int32)

        src = src_ref[...]                                       # (HWi, 2) int32: (jx, jy)
        jx = src[:, 0:1]                                         # (HWi, 1)
        jy = src[:, 1:2]
        # Factorized one-hot bilinear sampling matrix. Out-of-range corner indices
        # never match any source index -> zeros padding for free.
        wx_term = (jnp.where(jx == x0, wx0, 0.0)
                   + jnp.where(jx == x0 + 1, wx1, 0.0))          # (HWi, HW)
        wy_term = (jnp.where(jy == y0, wy0, 0.0)
                   + jnp.where(jy == y0 + 1, wy1, 0.0))          # (HWi, HW)
        samp = wx_term * wy_term                                 # (HWi, HW)
        # TODO(synk): at real resolutions tile this stage over HW (output rows) so
        # `samp` stays a few MiB per tile (v7x VMEM).
        o_ref[0] = jnp.dot(high, samp, preferred_element_type=jnp.float32)  # (Cin, HW)

    return kernel


# ----------------------------- JAX / numpy glue -----------------------------

def _interp_matrix(in_size, out_size):
    """Row-interpolation matrix matching F.interpolate(bilinear, align_corners=False)."""
    scale = in_size / out_size
    dst = np.arange(out_size, dtype=np.float64)
    src = np.maximum((dst + 0.5) * scale - 0.5, 0.0)
    i0 = np.minimum(np.floor(src).astype(np.int64), in_size - 1)
    i1 = np.minimum(i0 + 1, in_size - 1)
    w1 = (src - i0).astype(np.float32)
    w0 = 1.0 - w1
    m = np.zeros((out_size, in_size), dtype=np.float32)
    m[np.arange(out_size), i0] += w0
    m[np.arange(out_size), i1] += w1
    return m


def align_module_forward(low_nchw, high_nchw, params):
    """AlignModule.forward((low_feature, h_feature)) -> warped h_feature (NCHW)."""
    low_nchw = low_nchw.astype(jnp.float32)
    high_nchw = high_nchw.astype(jnp.float32)
    N, Cin, H, W = low_nchw.shape
    _, Cin2, hh, wh = high_nchw.shape
    assert Cin2 == Cin
    Cout = params["w_down_l"].shape[1]
    HW, HWi, C2 = H * W, hh * wh, 2 * Cout

    # lane-dense (C, HW) layout == flattened NCHW: no transposes needed.
    low_flat = low_nchw.reshape(N, Cin, HW)
    high_flat = high_nchw.reshape(N, Cin, HWi)

    # weight re-layouts (wrapper-side, one-off)
    wdl_T = jnp.transpose(params["w_down_l"], (1, 0))                       # (Cout, Cin)
    wdh_T = jnp.transpose(params["w_down_h"], (1, 0))                       # (Cout, Cin)
    wflow2d = jnp.transpose(params["w_flow"], (2, 0, 1)).reshape(2, 9 * C2)  # (2, 9*C2)

    # static bilinear-resize sampling matrix R^T (hh*wh, H*W)
    Ah = _interp_matrix(hh, H)                                               # (H, hh)
    Aw = _interp_matrix(wh, W)                                               # (W, wh)
    R_T = jnp.asarray(np.einsum("Ph,Qw->hwPQ", Ah, Aw).reshape(HWi, HW))

    # static border-validity masks for the 9 conv taps (k = (dh+1)*3 + (dw+1))
    ys, xs = np.meshgrid(np.arange(H), np.arange(W), indexing="ij")
    masks = np.stack(
        [((xs + dw >= 0) & (xs + dw < W) & (ys + dh >= 0) & (ys + dh < H))
         .astype(np.float32).reshape(HW)
         for dh in (-1, 0, 1) for dw in (-1, 0, 1)], axis=0)                 # (9, HW)
    masks = jnp.asarray(masks)

    # static normalized base grid ([-1,1]) and integer source coordinates
    gx = np.linspace(-1.0, 1.0, W, dtype=np.float32)
    gy = np.linspace(-1.0, 1.0, H, dtype=np.float32)
    base = jnp.asarray(np.stack(
        [np.broadcast_to(gx[None, :], (H, W)).reshape(HW),
         np.broadcast_to(gy[:, None], (H, W)).reshape(HW)], axis=0))         # (2, HW)
    jj = np.arange(HWi)
    src_xy = jnp.asarray(np.stack([jj % wh, jj // wh], axis=1).astype(np.int32))  # (HWi, 2)

    kernel = _make_fused_align_kernel(H, W, hh, wh, Cin, Cout)
    out_flat = pl.pallas_call(
        kernel,
        out_shape=jax.ShapeDtypeStruct((N, Cin, HW), jnp.float32),
        grid=(N,),
        in_specs=[
            pl.BlockSpec((1, Cin, HW), lambda n: (n, 0, 0)),      # low
            pl.BlockSpec((1, Cin, HWi), lambda n: (n, 0, 0)),     # original high
            pl.BlockSpec((Cout, Cin), lambda n: (0, 0)),          # down_l weight^T
            pl.BlockSpec((Cout, Cin), lambda n: (0, 0)),          # down_h weight^T
            pl.BlockSpec((HWi, HW), lambda n: (0, 0)),            # resize matrix R^T
            pl.BlockSpec((2, 9 * C2), lambda n: (0, 0)),          # flow_make weight (im2col)
            pl.BlockSpec((9, HW), lambda n: (0, 0)),              # tap border masks
            pl.BlockSpec((2, HW), lambda n: (0, 0)),              # base grid
            pl.BlockSpec((HWi, 2), lambda n: (0, 0)),             # source (jx, jy)
        ],
        out_specs=pl.BlockSpec((1, Cin, HW), lambda n: (n, 0, 0)),
        compiler_params=pltpu.CompilerParams(dimension_semantics=("parallel",)),
    )(low_flat, high_flat, wdl_T, wdh_T, R_T, wflow2d, masks, base, src_xy)

    return out_flat.reshape(N, Cin, H, W)


# ----------------------------- pure-JAX reference (sanity check) -----------------------------

def _reference_forward(low_nchw, high_nchw, params):
    low = jnp.transpose(low_nchw, (0, 2, 3, 1)).astype(jnp.float32)
    high = jnp.transpose(high_nchw, (0, 2, 3, 1)).astype(jnp.float32)
    N, H, W, Cin = low.shape
    _, hh, wh, _ = high.shape
    Cout = params["w_down_l"].shape[1]

    low_d = jnp.einsum("nhwc,cd->nhwd", low, params["w_down_l"])
    high_d = jnp.einsum("nhwc,cd->nhwd", high, params["w_down_h"])
    Ah = jnp.asarray(_interp_matrix(hh, H))
    Aw = jnp.asarray(_interp_matrix(wh, W))
    high_up = jnp.einsum("Ph,Qw,nhwc->nPQc", Ah, Aw, high_d)
    cat = jnp.concatenate([high_up, low_d], axis=-1)
    w_hwio = params["w_flow"].reshape(3, 3, 2 * Cout, 2)
    flow = lax.conv_general_dilated(cat, w_hwio, (1, 1), "SAME",
                                    dimension_numbers=("NHWC", "HWIO", "NHWC"))

    gx = jnp.asarray(np.linspace(-1.0, 1.0, W, dtype=np.float32))
    gy = jnp.asarray(np.linspace(-1.0, 1.0, H, dtype=np.float32))
    cx = gx[None, None, :] + flow[..., 0] / W
    cy = gy[None, :, None] + flow[..., 1] / H
    ix = ((cx + 1.0) * wh - 1.0) * 0.5
    iy = ((cy + 1.0) * hh - 1.0) * 0.5
    x0 = jnp.floor(ix)
    y0 = jnp.floor(iy)
    wx1 = ix - x0
    wx0 = 1.0 - wx1
    wy1 = iy - y0
    wy0 = 1.0 - wy1
    hi_flat = high.reshape(N, hh * wh, Cin)

    def gather(yc, xc, wgt):
        yi = yc.astype(jnp.int32)
        xi = xc.astype(jnp.int32)
        valid = ((xi >= 0) & (xi < wh) & (yi >= 0) & (yi < hh)).astype(jnp.float32)
        idx = jnp.clip(yi, 0, hh - 1) * wh + jnp.clip(xi, 0, wh - 1)
        g = jnp.take_along_axis(hi_flat, idx.reshape(N, H * W, 1), axis=1)
        return g.reshape(N, H, W, Cin) * (wgt * valid)[..., None]

    out = (gather(y0, x0, wy0 * wx0) + gather(y0, x0 + 1, wy0 * wx1)
           + gather(y0 + 1, x0, wy1 * wx0) + gather(y0 + 1, x0 + 1, wy1 * wx1))
    return jnp.transpose(out, (0, 3, 1, 2))


# ----------------------------- main -----------------------------

if __name__ == "__main__":
    key = jax.random.PRNGKey(0)
    k1, k2, k3, k4, k5 = jax.random.split(key, 5)

    N, inplane, outplane = 2, 4, 4
    H, W = 16, 16      # low-level (high-resolution) feature map
    hh, wh = 8, 8      # high-level (low-resolution) feature map

    low_feature = jax.random.normal(k1, (N, inplane, H, W), jnp.float32)
    h_feature = jax.random.normal(k2, (N, inplane, hh, wh), jnp.float32)

    # Synthetic parameters (PyTorch shapes: down_* (out,in,1,1), flow_make
    # (2, 2*out, 3, 3) -- stored here in kernel-friendly layouts).
    params = {
        "w_down_l": 0.2 * jax.random.normal(k3, (inplane, outplane), jnp.float32),
        "w_down_h": 0.2 * jax.random.normal(k4, (inplane, outplane), jnp.float32),
        "w_flow":   0.2 * jax.random.normal(k5, (9, 2 * outplane, 2), jnp.float32),
    }

    out = jax.block_until_ready(align_module_forward(low_feature, h_feature, params))
    ref = jax.block_until_ready(_reference_forward(low_feature, h_feature, params))

    assert out.shape == (N, inplane, H, W)
    # tolerance loose enough for the MXU's default bf16-pass matmul precision
    np.testing.assert_allclose(np.asarray(out), np.asarray(ref), atol=3e-2, rtol=3e-2)
    print("KERNEL_OK")
</pallas_src>

<mosaic_0001>
module attributes {stable_mosaic.version = 11 : i64} {
  func.func @kernel(%arg0: i32, %arg1: memref<1x4x256xf32, #tpu.memory_space<vmem>>, %arg2: memref<1x4x64xf32, #tpu.memory_space<vmem>>, %arg3: memref<4x4xf32, #tpu.memory_space<vmem>>, %arg4: memref<4x4xf32, #tpu.memory_space<vmem>>, %arg5: memref<64x256xf32, #tpu.memory_space<vmem>>, %arg6: memref<2x72xf32, #tpu.memory_space<vmem>>, %arg7: memref<9x256xf32, #tpu.memory_space<vmem>>, %arg8: memref<2x256xf32, #tpu.memory_space<vmem>>, %arg9: memref<64x2xi32, #tpu.memory_space<vmem>>, %arg10: memref<1x4x256xf32, #tpu.memory_space<vmem>>) attributes {dimension_semantics = [#tpu.dimension_semantics<parallel>], iteration_bounds = array<i64: 2>, scalar_prefetch = 0 : i64, scratch_operands = 0 : i64, tpu.core_type = #tpu.core_type<tc>, window_params = [{transform_indices = @transform_0, window_bounds = array<i64: 1, 4, 256>}, {transform_indices = @transform_1, window_bounds = array<i64: 1, 4, 64>}, {pipeline_mode = #tpu.pipeline_mode<synchronous>, transform_indices = @transform_2, window_bounds = array<i64: 4, 4>}, {pipeline_mode = #tpu.pipeline_mode<synchronous>, transform_indices = @transform_3, window_bounds = array<i64: 4, 4>}, {pipeline_mode = #tpu.pipeline_mode<synchronous>, transform_indices = @transform_4, window_bounds = array<i64: 64, 256>}, {pipeline_mode = #tpu.pipeline_mode<synchronous>, transform_indices = @transform_5, window_bounds = array<i64: 2, 72>}, {pipeline_mode = #tpu.pipeline_mode<synchronous>, transform_indices = @transform_6, window_bounds = array<i64: 9, 256>}, {pipeline_mode = #tpu.pipeline_mode<synchronous>, transform_indices = @transform_7, window_bounds = array<i64: 2, 256>}, {pipeline_mode = #tpu.pipeline_mode<synchronous>, transform_indices = @transform_8, window_bounds = array<i64: 64, 2>}, {transform_indices = @transform_9, window_bounds = array<i64: 1, 4, 256>}]} {
    %c0 = arith.constant 0 : index
    %c0_0 = arith.constant 0 : index
    %c0_1 = arith.constant 0 : index
    %0 = vector.load %arg1[%c0, %c0_0, %c0_1] : memref<1x4x256xf32, #tpu.memory_space<vmem>>, vector<1x4x256xf32>
    %1 = vector.shape_cast %0 : vector<1x4x256xf32> to vector<4x256xf32>
    %c0_2 = arith.constant 0 : index
    %c0_3 = arith.constant 0 : index
    %c0_4 = arith.constant 0 : index
    %2 = vector.load %arg2[%c0_2, %c0_3, %c0_4] : memref<1x4x64xf32, #tpu.memory_space<vmem>>, vector<1x4x64xf32>
    %3 = vector.shape_cast %2 : vector<1x4x64xf32> to vector<4x64xf32>
    %c0_5 = arith.constant 0 : index
    %c0_6 = arith.constant 0 : index
    %4 = vector.load %arg3[%c0_5, %c0_6] : memref<4x4xf32, #tpu.memory_space<vmem>>, vector<4x4xf32>
    %cst = arith.constant dense<0.000000e+00> : vector<4x256xf32>
    %5 = tpu.matmul %4, %1, %cst {dimension_numbers = #tpu.dot_dimension_numbers<[1], [0], [0], [1], [0, 0, 1, 1], [], []>} : vector<4x4xf32>, vector<4x256xf32>, vector<4x256xf32> -> vector<4x256xf32>
    %c0_7 = arith.constant 0 : index
    %c0_8 = arith.constant 0 : index
    %6 = vector.load %arg4[%c0_7, %c0_8] : memref<4x4xf32, #tpu.memory_space<vmem>>, vector<4x4xf32>
    %cst_9 = arith.constant dense<0.000000e+00> : vector<4x64xf32>
    %7 = tpu.matmul %6, %3, %cst_9 {dimension_numbers = #tpu.dot_dimension_numbers<[1], [0], [0], [1], [0, 0, 1, 1], [], []>} : vector<4x4xf32>, vector<4x64xf32>, vector<4x64xf32> -> vector<4x64xf32>
    %c0_10 = arith.constant 0 : index
    %c0_11 = arith.constant 0 : index
    %8 = vector.load %arg5[%c0_10, %c0_11] : memref<64x256xf32, #tpu.memory_space<vmem>>, vector<64x256xf32>
    %cst_12 = arith.constant dense<0.000000e+00> : vector<4x256xf32>
    %9 = tpu.matmul %7, %8, %cst_12 {dimension_numbers = #tpu.dot_dimension_numbers<[1], [0], [0], [1], [0, 0, 1, 1], [], []>} : vector<4x64xf32>, vector<64x256xf32>, vector<4x256xf32> -> vector<4x256xf32>
    %10 = tpu.concatenate %9, %5 in 0 : vector<4x256xf32>, vector<4x256xf32> -> vector<8x256xf32>
    %c0_13 = arith.constant 0 : index
    %c0_14 = arith.constant 0 : index
    %11 = vector.load %arg7[%c0_13, %c0_14] : memref<9x256xf32, #tpu.memory_space<vmem>>, vector<9x256xf32>
    %c17_i32 = arith.constant 17 : i32
    %12 = tpu.dynamic_rotate %10 by %c17_i32 dim 1 : vector<8x256xf32>, i32 -> vector<8x256xf32>
    %13 = vector.extract_strided_slice %11 {offsets = [0, 0], sizes = [1, 256], strides = [1, 1]} : vector<9x256xf32> to vector<1x256xf32>
    %14 = vector.broadcast %13 : vector<1x256xf32> to vector<8x256xf32>
    %15 = arith.mulf %12, %14 : vector<8x256xf32>
    %c16_i32 = arith.constant 16 : i32
    %16 = tpu.dynamic_rotate %10 by %c16_i32 dim 1 : vector<8x256xf32>, i32 -> vector<8x256xf32>
    %17 = vector.extract_strided_slice %11 {offsets = [1, 0], sizes = [1, 256], strides = [1, 1]} : vector<9x256xf32> to vector<1x256xf32>
    %18 = vector.broadcast %17 : vector<1x256xf32> to vector<8x256xf32>
    %19 = arith.mulf %16, %18 : vector<8x256xf32>
    %c15_i32 = arith.constant 15 : i32
    %20 = tpu.dynamic_rotate %10 by %c15_i32 dim 1 : vector<8x256xf32>, i32 -> vector<8x256xf32>
    %21 = vector.extract_strided_slice %11 {offsets = [2, 0], sizes = [1, 256], strides = [1, 1]} : vector<9x256xf32> to vector<1x256xf32>
    %22 = vector.broadcast %21 : vector<1x256xf32> to vector<8x256xf32>
    %23 = arith.mulf %20, %22 : vector<8x256xf32>
    %c1_i32 = arith.constant 1 : i32
    %24 = tpu.dynamic_rotate %10 by %c1_i32 dim 1 : vector<8x256xf32>, i32 -> vector<8x256xf32>
    %25 = vector.extract_strided_slice %11 {offsets = [3, 0], sizes = [1, 256], strides = [1, 1]} : vector<9x256xf32> to vector<1x256xf32>
    %26 = vector.broadcast %25 : vector<1x256xf32> to vector<8x256xf32>
    %27 = arith.mulf %24, %26 : vector<8x256xf32>
    %28 = vector.extract_strided_slice %11 {offsets = [4, 0], sizes = [1, 256], strides = [1, 1]} : vector<9x256xf32> to vector<1x256xf32>
    %29 = vector.broadcast %28 : vector<1x256xf32> to vector<8x256xf32>
    %30 = arith.mulf %10, %29 : vector<8x256xf32>
    %c255_i32 = arith.constant 255 : i32
    %31 = tpu.dynamic_rotate %10 by %c255_i32 dim 1 : vector<8x256xf32>, i32 -> vector<8x256xf32>
    %32 = vector.extract_strided_slice %11 {offsets = [5, 0], sizes = [1, 256], strides = [1, 1]} : vector<9x256xf32> to vector<1x256xf32>
    %33 = vector.broadcast %32 : vector<1x256xf32> to vector<8x256xf32>
    %34 = arith.mulf %31, %33 : vector<8x256xf32>
    %c241_i32 = arith.constant 241 : i32
    %35 = tpu.dynamic_rotate %10 by %c241_i32 dim 1 : vector<8x256xf32>, i32 -> vector<8x256xf32>
    %36 = vector.extract_strided_slice %11 {offsets = [6, 0], sizes = [1, 256], strides = [1, 1]} : vector<9x256xf32> to vector<1x256xf32>
    %37 = vector.broadcast %36 : vector<1x256xf32> to vector<8x256xf32>
    %38 = arith.mulf %35, %37 : vector<8x256xf32>
    %c240_i32 = arith.constant 240 : i32
    %39 = tpu.dynamic_rotate %10 by %c240_i32 dim 1 : vector<8x256xf32>, i32 -> vector<8x256xf32>
    %40 = vector.extract_strided_slice %11 {offsets = [7, 0], sizes = [1, 256], strides = [1, 1]} : vector<9x256xf32> to vector<1x256xf32>
    %41 = vector.broadcast %40 : vector<1x256xf32> to vector<8x256xf32>
    %42 = arith.mulf %39, %41 : vector<8x256xf32>
    %c239_i32 = arith.constant 239 : i32
    %43 = tpu.dynamic_rotate %10 by %c239_i32 dim 1 : vector<8x256xf32>, i32 -> vector<8x256xf32>
    %44 = vector.extract_strided_slice %11 {offsets = [8, 0], sizes = [1, 256], strides = [1, 1]} : vector<9x256xf32> to vector<1x256xf32>
    %45 = vector.broadcast %44 : vector<1x256xf32> to vector<8x256xf32>
    %46 = arith.mulf %43, %45 : vector<8x256xf32>
    %47 = tpu.concatenate %15, %19, %23, %27, %30, %34, %38, %42, %46 in 0 : vector<8x256xf32>, vector<8x256xf32>, vector<8x256xf32>, vector<8x256xf32>, vector<8x256xf32>, vector<8x256xf32>, vector<8x256xf32>, vector<8x256xf32>, vector<8x256xf32> -> vector<72x256xf32>
    %c0_15 = arith.constant 0 : index
    %c0_16 = arith.constant 0 : index
    %48 = vector.load %arg6[%c0_15, %c0_16] : memref<2x72xf32, #tpu.memory_space<vmem>>, vector<2x72xf32>
    %cst_17 = arith.constant dense<0.000000e+00> : vector<2x256xf32>
    %49 = tpu.matmul %48, %47, %cst_17 {dimension_numbers = #tpu.dot_dimension_numbers<[1], [0], [0], [1], [0, 0, 1, 1], [], []>} : vector<2x72xf32>, vector<72x256xf32>, vector<2x256xf32> -> vector<2x256xf32>
    %c0_18 = arith.constant 0 : index
    %c0_19 = arith.constant 0 : index
    %50 = vector.load %arg8[%c0_18, %c0_19] : memref<2x256xf32, #tpu.memory_space<vmem>>, vector<2x256xf32>
    %51 = vector.extract_strided_slice %50 {offsets = [0, 0], sizes = [1, 256], strides = [1, 1]} : vector<2x256xf32> to vector<1x256xf32>
    %52 = vector.extract_strided_slice %49 {offsets = [0, 0], sizes = [1, 256], strides = [1, 1]} : vector<2x256xf32> to vector<1x256xf32>
    %cst_20 = arith.constant 6.250000e-02 : f32
    %53 = vector.broadcast %cst_20 : f32 to vector<1x256xf32>
    %54 = arith.mulf %52, %53 : vector<1x256xf32>
    %55 = arith.addf %51, %54 : vector<1x256xf32>
    %56 = vector.extract_strided_slice %50 {offsets = [1, 0], sizes = [1, 256], strides = [1, 1]} : vector<2x256xf32> to vector<1x256xf32>
    %57 = vector.extract_strided_slice %49 {offsets = [1, 0], sizes = [1, 256], strides = [1, 1]} : vector<2x256xf32> to vector<1x256xf32>
    %cst_21 = arith.constant 6.250000e-02 : f32
    %58 = vector.broadcast %cst_21 : f32 to vector<1x256xf32>
    %59 = arith.mulf %57, %58 : vector<1x256xf32>
    %60 = arith.addf %56, %59 : vector<1x256xf32>
    %cst_22 = arith.constant 8.000000e+00 : f32
    %61 = vector.broadcast %cst_22 : f32 to vector<1x256xf32>
    %62 = arith.mulf %55, %61 : vector<1x256xf32>
    %cst_23 = arith.constant 7.000000e+00 : f32
    %63 = vector.broadcast %cst_23 : f32 to vector<1x256xf32>
    %64 = arith.addf %62, %63 : vector<1x256xf32>
    %cst_24 = arith.constant 5.000000e-01 : f32
    %65 = vector.broadcast %cst_24 : f32 to vector<1x256xf32>
    %66 = arith.mulf %64, %65 : vector<1x256xf32>
    %cst_25 = arith.constant 8.000000e+00 : f32
    %67 = vector.broadcast %cst_25 : f32 to vector<1x256xf32>
    %68 = arith.mulf %60, %67 : vector<1x256xf32>
    %cst_26 = arith.constant 7.000000e+00 : f32
    %69 = vector.broadcast %cst_26 : f32 to vector<1x256xf32>
    %70 = arith.addf %68, %69 : vector<1x256xf32>
    %cst_27 = arith.constant 5.000000e-01 : f32
    %71 = vector.broadcast %cst_27 : f32 to vector<1x256xf32>
    %72 = arith.mulf %70, %71 : vector<1x256xf32>
    %73 = math.floor %66 : vector<1x256xf32>
    %74 = math.floor %72 : vector<1x256xf32>
    %75 = arith.subf %66, %73 : vector<1x256xf32>
    %cst_28 = arith.constant 1.000000e+00 : f32
    %76 = vector.broadcast %cst_28 : f32 to vector<1x256xf32>
    %77 = arith.subf %76, %75 : vector<1x256xf32>
    %78 = arith.subf %72, %74 : vector<1x256xf32>
    %cst_29 = arith.constant 1.000000e+00 : f32
    %79 = vector.broadcast %cst_29 : f32 to vector<1x256xf32>
    %80 = arith.subf %79, %78 : vector<1x256xf32>
    %81 = arith.fptosi %73 : vector<1x256xf32> to vector<1x256xi32>
    %82 = arith.fptosi %74 : vector<1x256xf32> to vector<1x256xi32>
    %c0_30 = arith.constant 0 : index
    %c0_31 = arith.constant 0 : index
    %83 = vector.load %arg9[%c0_30, %c0_31] : memref<64x2xi32, #tpu.memory_space<vmem>>, vector<64x2xi32>
    %84 = vector.extract_strided_slice %83 {offsets = [0, 0], sizes = [64, 1], strides = [1, 1]} : vector<64x2xi32> to vector<64x1xi32>
    %85 = vector.extract_strided_slice %83 {offsets = [0, 1], sizes = [64, 1], strides = [1, 1]} : vector<64x2xi32> to vector<64x1xi32>
    %86 = vector.broadcast %84 : vector<64x1xi32> to vector<64x256xi32>
    %87 = vector.broadcast %81 : vector<1x256xi32> to vector<64x256xi32>
    %88 = arith.cmpi eq, %86, %87 : vector<64x256xi32>
    %cst_32 = arith.constant 0.000000e+00 : f32
    %89 = vector.shape_cast %77 : vector<1x256xf32> to vector<1x256xf32>
    %90 = vector.broadcast %89 : vector<1x256xf32> to vector<64x256xf32>
    %91 = vector.broadcast %cst_32 : f32 to vector<64x256xf32>
    %92 = arith.select %88, %90, %91 : vector<64x256xi1>, vector<64x256xf32>
    %c1_i32_33 = arith.constant 1 : i32
    %93 = vector.broadcast %c1_i32_33 : i32 to vector<1x256xi32>
    %94 = arith.addi %81, %93 : vector<1x256xi32>
    %95 = vector.broadcast %84 : vector<64x1xi32> to vector<64x256xi32>
    %96 = vector.broadcast %94 : vector<1x256xi32> to vector<64x256xi32>
    %97 = arith.cmpi eq, %95, %96 : vector<64x256xi32>
    %cst_34 = arith.constant 0.000000e+00 : f32
    %98 = vector.shape_cast %75 : vector<1x256xf32> to vector<1x256xf32>
    %99 = vector.broadcast %98 : vector<1x256xf32> to vector<64x256xf32>
    %100 = vector.broadcast %cst_34 : f32 to vector<64x256xf32>
    %101 = arith.select %97, %99, %100 : vector<64x256xi1>, vector<64x256xf32>
    %102 = arith.addf %92, %101 : vector<64x256xf32>
    %103 = vector.broadcast %85 : vector<64x1xi32> to vector<64x256xi32>
    %104 = vector.broadcast %82 : vector<1x256xi32> to vector<64x256xi32>
    %105 = arith.cmpi eq, %103, %104 : vector<64x256xi32>
    %cst_35 = arith.constant 0.000000e+00 : f32
    %106 = vector.shape_cast %80 : vector<1x256xf32> to vector<1x256xf32>
    %107 = vector.broadcast %106 : vector<1x256xf32> to vector<64x256xf32>
    %108 = vector.broadcast %cst_35 : f32 to vector<64x256xf32>
    %109 = arith.select %105, %107, %108 : vector<64x256xi1>, vector<64x256xf32>
    %c1_i32_36 = arith.constant 1 : i32
    %110 = vector.broadcast %c1_i32_36 : i32 to vector<1x256xi32>
    %111 = arith.addi %82, %110 : vector<1x256xi32>
    %112 = vector.broadcast %85 : vector<64x1xi32> to vector<64x256xi32>
    %113 = vector.broadcast %111 : vector<1x256xi32> to vector<64x256xi32>
    %114 = arith.cmpi eq, %112, %113 : vector<64x256xi32>
    %cst_37 = arith.constant 0.000000e+00 : f32
    %115 = vector.shape_cast %78 : vector<1x256xf32> to vector<1x256xf32>
    %116 = vector.broadcast %115 : vector<1x256xf32> to vector<64x256xf32>
    %117 = vector.broadcast %cst_37 : f32 to vector<64x256xf32>
    %118 = arith.select %114, %116, %117 : vector<64x256xi1>, vector<64x256xf32>
    %119 = arith.addf %109, %118 : vector<64x256xf32>
    %120 = arith.mulf %102, %119 : vector<64x256xf32>
    %cst_38 = arith.constant dense<0.000000e+00> : vector<4x256xf32>
    %121 = tpu.matmul %3, %120, %cst_38 {dimension_numbers = #tpu.dot_dimension_numbers<[1], [0], [0], [1], [0, 0, 1, 1], [], []>} : vector<4x64xf32>, vector<64x256xf32>, vector<4x256xf32> -> vector<4x256xf32>
    %c0_39 = arith.constant 0 : index
    %c0_40 = arith.constant 0 : index
    %c0_41 = arith.constant 0 : index
    %122 = vector.load %arg10[%c0_39, %c0_40, %c0_41] : memref<1x4x256xf32, #tpu.memory_space<vmem>>, vector<1x4x256xf32>
    %123 = vector.shape_cast %122 : vector<1x4x256xf32> to vector<4x256xf32>
    %124 = vector.shape_cast %121 : vector<4x256xf32> to vector<1x4x256xf32>
    tpu.vector_store %arg10[%c0_39, %c0_40, %c0_41], %124 {strides = array<i32>} : memref<1x4x256xf32, #tpu.memory_space<vmem>>, vector<1x4x256xf32>,
    return
  }
  func.func @transform_0(%arg0: i32) -> (i32, i32, i32) {
    %c0_i32 = arith.constant 0 : i32
    %c0_i32_0 = arith.constant 0 : i32
    %c0_i32_1 = arith.constant 0 : i32
    return %arg0, %c0_i32, %c0_i32_0 : i32, i32, i32
  }
  func.func @transform_1(%arg0: i32) -> (i32, i32, i32) {
    %c0_i32 = arith.constant 0 : i32
    %c0_i32_0 = arith.constant 0 : i32
    %c0_i32_1 = arith.constant 0 : i32
    return %arg0, %c0_i32, %c0_i32_0 : i32, i32, i32
  }
  func.func @transform_2(%arg0: i32) -> (i32, i32) {
    %c0_i32 = arith.constant 0 : i32
    %c0_i32_0 = arith.constant 0 : i32
    %c0_i32_1 = arith.constant 0 : i32
    return %c0_i32, %c0_i32_0 : i32, i32
  }
  func.func @transform_3(%arg0: i32) -> (i32, i32) {
    %c0_i32 = arith.constant 0 : i32
    %c0_i32_0 = arith.constant 0 : i32
    %c0_i32_1 = arith.constant 0 : i32
    return %c0_i32, %c0_i32_0 : i32, i32
  }
  func.func @transform_4(%arg0: i32) -> (i32, i32) {
    %c0_i32 = arith.constant 0 : i32
    %c0_i32_0 = arith.constant 0 : i32
    %c0_i32_1 = arith.constant 0 : i32
    return %c0_i32, %c0_i32_0 : i32, i32
  }
  func.func @transform_5(%arg0: i32) -> (i32, i32) {
    %c0_i32 = arith.constant 0 : i32
    %c0_i32_0 = arith.constant 0 : i32
    %c0_i32_1 = arith.constant 0 : i32
    return %c0_i32, %c0_i32_0 : i32, i32
  }
  func.func @transform_6(%arg0: i32) -> (i32, i32) {
    %c0_i32 = arith.constant 0 : i32
    %c0_i32_0 = arith.constant 0 : i32
    %c0_i32_1 = arith.constant 0 : i32
    return %c0_i32, %c0_i32_0 : i32, i32
  }
  func.func @transform_7(%arg0: i32) -> (i32, i32) {
    %c0_i32 = arith.constant 0 : i32
    %c0_i32_0 = arith.constant 0 : i32
    %c0_i32_1 = arith.constant 0 : i32
    return %c0_i32, %c0_i32_0 : i32, i32
  }
  func.func @transform_8(%arg0: i32) -> (i32, i32) {
    %c0_i32 = arith.constant 0 : i32
    %c0_i32_0 = arith.constant 0 : i32
    %c0_i32_1 = arith.constant 0 : i32
    return %c0_i32, %c0_i32_0 : i32, i32
  }
  func.func @transform_9(%arg0: i32) -> (i32, i32, i32) {
    %c0_i32 = arith.constant 0 : i32
    %c0_i32_0 = arith.constant 0 : i32
    %c0_i32_1 = arith.constant 0 : i32
    return %arg0, %c0_i32, %c0_i32_0 : i32, i32, i32
  }
}

</mosaic_0001>

<bundles_post_ra>
// kernel: tpu_custom_call.1
= control target key start
LH: loop header
LB: loop body
LE: loop exit
PB: predicated region body
PF: predicated region fallthrough
CT: control target
= control target key end

     0   :  { %14 = vsyncpa [#allocation3], 0  ;;  %s2340_s0 = inlined_call_operand.vmem [shape: f32[2,4,256], index: 0, kind: input, shape index: {}]   ;;  %s2341_s1 = inlined_call_operand.vmem [shape: f32[2,4,64], index: 1, kind: input, shape index: {}]   ;;  %s2342_s2 = inlined_call_operand.vmem [shape: f32[4,4], index: 2, kind: input, shape index: {}]   ;;  %s2343_s3 = inlined_call_operand.vmem [shape: f32[4,4], index: 3, kind: input, shape index: {}]   ;;  %s2344_s4 = inlined_call_operand.hbm [shape: f32[64,256], index: 4, kind: input, shape index: {}]   ;;  %s2345_s5 = inlined_call_operand.vmem [shape: f32[2,72], index: 5, kind: input, shape index: {}]   ;;  %s2346_s6 = inlined_call_operand.vmem [shape: f32[9,256], index: 6, kind: input, shape index: {}]   ;;  %s2347_s7 = inlined_call_operand.vmem [shape: f32[2,256], index: 7, kind: input, shape index: {}]   ;;  %s2348_s8 = inlined_call_operand.vmem [shape: s32[64,2], index: 8, kind: input, shape index: {}]   ;;  %s2349_s9 = inlined_call_operand.hbm [shape: f32[2,4,256], index: 9, kind: output, shape index: {}]  }
   0x1   :  { %15 = vsyncpa [#allocation4], 0 }
   0x2   :  { %17 = vsyncpa [#allocation4 + $0x1], 0  ;;  %s1744_s30 = smov 0   ;;  %s1746_s10 = smov 0  }
   0x3   :  { %s1748_s11 = smov 0   ;;  %s1750_s12 = smov 0  }
   0x4 LB: > { %s1765_s13 = sadd.s32 4294967295, %s1675_s12   ;;  %s1421_s14 = sadd.s32 4294967294, %s1675_s12   ;;  %s1675_s12 = sphi %s1750_s12, %s2365_s12   ;;  %s1671_s11 = sphi %s1748_s11, %s2364_s11   ;;  %s1667_s10 = sphi %s1746_s10, %s2363_s10   ;;  %s1663_s30 = sphi %s1744_s30, %s2362_s30  }
   0x5   : > { %s1769_s15 = sadd.s32 1, %s1675_s12   ;;  %s229_s16 = sadd.s32 1, %s1671_s11 }
   0x6   : > { %s226_s17 = ssub.s32 %s1675_s12, %s1769_s15  ;;  %p239_p0 = scmp.ne.s32.totalorder %s1671_s11, %s1667_s10 }
   0x7   : > { %p227_p1 = scmp.eq.s32.totalorder %s226_s17, 0  ;;  %p240_p2 = scmp.eq.s32.totalorder %s1765_s13, 1 }
   0x8   : > { %p245_p3 = scmp.ne.s32.totalorder %s1667_s10, %s1663_s30  ;;  %p246_p4 = scmp.eq.s32.totalorder %s1421_s14, 1 }
   0x9   : > { %s1780_s18 = scalar_select %p227_p1, %s1671_s11, %s229_s16  }
   0xa   : > { %p1782_p5 = por %p240_p2, %p239_p0  ;;  %p1786_p6 = por %p246_p4, %p245_p3 }
   0xb   : > { %p1422_p7 = scmp.ge.s32.totalorder %s1675_s12, 1  ;;  %p253_p8 = scmp.lt.s32.totalorder %s1675_s12, 3 }
   0xc   : > { %s2353_s19 = scalar_select %p1782_p5, 1, 0 }
   0xd   : > { %s2354_s20 = scalar_select %p1786_p6, 1, 0 }
   0xe   : > { %p2350_p9 = scmp.eq.s32.totalorder %s1765_s13, 0  ;;  %p1793_p10 = pnand %p1422_p7, %p253_p8 }
   0xf   : > { %s1677_s22 = smov [#allocation2]   ;;  %s1581_s27 = scalar_lea.hbm %s2344_s4, 2048 }
  0x10   : > { %s2355_s21 = scalar_select %p1793_p10, 1, 0 }
  0x11   : > { %s271_s23 = sshll.u32 %s1677_s22, 4  ;;  %p1511_p11 = pneg %p1793_p10  ;;  %s272_s23 = int_to_ptr.vmem [resolvable:$true] %s271_s23 }
  0x12   : > { %p1582_p13 = scmp.ne.s32.totalorder %s2344_s4, %s1581_s27  ;;  %p1588_p3 = scmp.lt.u32.totalorder %s1581_s27, %s2344_s4 }
  0x13   : > { %p1801_p12 = pnand %p2350_p9, %p1511_p11 }
  0x15   : > { %p1583_p0 = pneg %p1801_p12 }
  0x17   : > { %p1584_p1 = pnand %p1583_p0, %p1582_p13 }
  0x19   : > { %p1585_p2 = pneg %p1584_p1 }
  0x1b   : > { %p1590_p4 = pnand %p1588_p3, %p1585_p2 }
  0x1d   : > { %1593 = shalt.err (!%p1590_p4)
}
  0x1e   : > { %s1594_s17 = scalar_lea.vmem %s272_s23, 2048  ;;  %p1602_p9 = scmp.lt.s32.totalorder %s272_s23, %s272_s23 }
  0x1f   : > { %p1595_p7 = scmp.ne.s32.totalorder %s272_s23, %s1594_s17  ;;  %p1603_p6 = scmp.lt.s32.totalorder %s1594_s17, %s1594_s17 }
  0x21   : > { %p1597_p8 = pnand %p1595_p7, %p1583_p0  ;;  %p1604_p5 = por %p1603_p6, %p1602_p9 }
  0x23   : > { %p1598_p11 = pneg %p1597_p8 }
  0x25   : > { %p1605_p10 = pnand %p1604_p5, %p1598_p11 }
  0x27   : > { %1608 = shalt.err (!%p1605_p10)
}
  0x28   : > { %s1678_s22 = smov 256   ;;  %s1679_s25 = smov 16  }
  0x29   : > { %1514 = dma.hbm_to_vmem [thread:$0]  (!%p1801_p12), %s2344_s4, 2048, %s272_s23, [#allocation3], %s1678_s22, %s1678_s22, %s1679_s25  }
  0x2a   : > { %p2357_p13 = scmp.ne.s32.totalorder %s2355_s21, 0 }
  0x2b   : > { %p2358_p1 = scmp.eq.s32.totalorder (!%p2357_p13), %s1765_s13, 0 }
  0x2c   : > { %314 = sbr.rel (%p2357_p13) target bundleno = 1168 (0x490), region = 56 }
  0x33   : > { %1654 = dma.done.wait (%p2358_p1), [#allocation3], 2048   ;;  %p2359_p0 = pmov %p2358_p1 }
  0x34   : > { %p354_p5 = scmp.lt.s32.totalorder %s1765_s13, 1  ;;  %v1680_v0 = vmov 0.0   ;;  %vm372_vm0 = vcmask 1043456   ;;  %v365_v3 = vld [vmem:[%s2342_s2] sm:$0xf]  ;;  %v526_v4 = vld [vmem:[#allocation2 + $0x8] sm:$0xff]  ;;  %v632_v50 = vlaneseq }
  0x35   : > { %1656 = vsyncadd (%p2359_p0), [#allocation3], 4294965248  ;;  %441 = vmatprep.mubr.f32.mxu1 %v1680_v0  ;;  %609 = vmatprep.mubr.f32.mxu0 %v1680_v0  ;;  %v528_v5 = vld [vmem:[#allocation2 + $0x18] sm:$0xff]  ;;  %vm368_vm1 = vcmask 31744   ;;  %v525_v7 = vld [vmem:[#allocation2] sm:$0xff]  ;;  %vm1681_vm2 = vmmov 0  }
  0x36   : > { %s355_s24 = scalar_select %p354_p5, %s1765_s13, 1  ;;  %v1455_v6 = vpack.c.bf16 %v528_v5, %v526_v4  ;;  %v527_v8 = vld [vmem:[#allocation2 + $0x10] sm:$0xff]  ;;  %v530_v9 = vld [vmem:[#allocation2 + $0x28] sm:$0xff]  ;;  %v532_v12 = vld [vmem:[#allocation2 + $0x38] sm:$0xff]  ;;  %vm541_vm3 = vcmask 523264   ;;  %v1688_v40 = vmov 0  }
  0x37   : > { %v1457_v11 = vpack.c.bf16 %v527_v8, %v525_v7  ;;  %v1459_v13 = vpack.c.bf16 %v532_v12, %v530_v9  ;;  %v529_v14 = vld [vmem:[#allocation2 + $0x20] sm:$0xff]  ;;  %v531_v15 = vld [vmem:[#allocation2 + $0x30] sm:$0xff]  ;;  %v534_v16 = vld [vmem:[#allocation2 + $0x48] sm:$0xff]  ;;  %s1684_s14 = smov 15   ;;  %s1685_s23 = smov 1   ;;  %1571 = vset.pattern.permute.xlu1 %v1688_v40  ;;  %1570 = vset.pattern.permute.xlu0 %v1688_v40  ;;  %v1691_v44 = vmov 1  }
  0x38   : > { %s1446_s27 = sshll.u32 %s355_s24, 3  ;;  %s1430_s29 = sshll.u32 %s355_s24, 2  ;;  %1456 = vmatprep.subr.bf16.mxu0 %v1455_v6  ;;  %v536_v17 = vld [vmem:[#allocation2 + $0x58] sm:$0xff]  ;;  %v448_v18 = vld [vmem:[%s2343_s3] sm:$0xf]  ;;  %v1461_v19 = vpack.c.bf16 %v531_v15, %v529_v14  ;;  %v535_v22 = vld [vmem:[#allocation2 + $0x50] sm:$0xff] }
  0x39   : > { %s358_s21 = scalar_lea.vmem %s2340_s0, %s1446_s27  ;;  %s362_s22 = scalar_lea.vmem %s2341_s1, %s1430_s29  ;;  %1458 = vmatpush1.bf16.msra.mxu0 %v1457_v11  ;;  %v1463_v20 = vpack.c.bf16 %v536_v17, %v534_v16  ;;  %v533_v21 = vld [vmem:[#allocation2 + $0x40] sm:$0xff]  ;;  %v538_v24 = vld [vmem:[#allocation2 + $0x68] sm:$0xff]  ;;  %v540_v25 = vld [vmem:[#allocation2 + $0x78] sm:$0xff]  ;;  %v1896_v53 = vand.u32 127, %v632_v50  ;;  %v1898_v54 = vshrl.u32 %v632_v50, 7  ;;  %vm777_vm12 = vcmask 588800  }
  0x3a   : > { %v363_v1 = vld [vmem:[%s358_s21] sm:$0xff]  ;;  %1460 = vmatprep.subr.bf16.mxu0 %v1459_v13  ;;  %v1465_v23 = vpack.c.bf16 %v535_v22, %v533_v21  ;;  %v1467_v26 = vpack.c.bf16 %v540_v25, %v538_v24  ;;  %v539_v28 = vld [vmem:[#allocation2 + $0x70] sm:$0xff]  ;;  %s1682_s27 = smov 16   ;;  %s1683_s29 = smov 17   ;;  %v875_v41 = vld [vmem:[%s2348_s8 + $0x8] sm:$0xff] }
  0x3b   : > { %v367_v2 = vcombine.high %v363_v1, %v363_v1  ;;  %v1839_v10 = vld [vmem:[%s362_s22] sm:$0xf]  ;;  %s1686_s21 = smov 127   ;;  %s1687_s16 = smov 113   ;;  %v876_v45 = vld [vmem:[%s2348_s8 + $0x10] sm:$0xff]  ;;  %v877_v46 = vld [vmem:[%s2348_s8 + $0x18] sm:$0xff] }
  0x3c   : > { %v537_v27 = vld [vmem:[#allocation2 + $0x60] sm:$0xff]  ;;  %s1689_s17 = smov 112   ;;  %s1690_s22 = smov 111   ;;  %v879_v47 = vld [vmem:[%s2348_s8 + $0x28] sm:$0xff]  ;;  %v880_v48 = vld [vmem:[%s2348_s8 + $0x30] sm:$0xff]  ;;  %v1901_v56 = vsub.s32 1, %v1898_v54 }
  0x3d   : > { %1431 = vmatprep.subr.msk.mxu1 %vm372_vm0, %v367_v2  ;;  %1462 = vmatpush1.bf16.msra.mxu0 %v1461_v19  ;;  %v1469_v29 = vpack.c.bf16 %v539_v28, %v537_v27  ;;  %v874_v42 = vld [vmem:[%s2348_s8] sm:$0xff]  ;;  %v881_v49 = vld [vmem:[%s2348_s8 + $0x38] sm:$0xff]  ;;  %v1904_v58 = vsub.s32 0, %v1898_v54  ;;  %vm651_vm4 = vcmp.lt.s32.totalorder %v1896_v53, 16  ;;  %v1908_v59 = vsub.s32 3, %v1898_v54  ;;  %v1918_v61 = vld [vmem:[%s2346_s6 + $0x8] sm:$0xff] }
  0x3e   : > { %1432 = vmatpush1.msk.msra.mxu1 %vm372_vm0, %v363_v1  ;;  %1464 = vmatprep.subr.bf16.mxu0 %v1463_v20  ;;  %v878_v43 = vld [vmem:[%s2348_s8 + $0x20] sm:$0xff]  ;;  %v1921_v62 = vsub.s32 2, %v1898_v54  ;;  %vm668_vm5 = vcmp.lt.s32.totalorder %v1896_v53, 15  ;;  %vm685_vm6 = vcmp.lt.s32.totalorder %v1896_v53, 1  ;;  %vm634_vm7 = vcmp.lt.s32.totalorder %v1896_v53, 17  ;;  %p2360_p9 = scmp.ne.s32.totalorder %s2353_s19, 0 }
  0x3f   : > { %1433 = vmatmul.mubr.msk.f32.vlgmr.msra.gmra.mrb[0].mxu1 %vm368_vm1, %v365_v3  ;;  %1450 = vmatprep.subr.mxu1 %v1680_v0  ;;  %v1913_v60 = vld [vmem:[%s2346_s6] sm:$0xff]  ;;  %v717_v3 = vsub.s32 5, %v1898_v54  ;;  %v695_v6 = vrot.slane %v1918_v61, %v1908_v59  ;;  %v644_v8 = vrot.slane %v1918_v61, %v1904_v58  ;;  %v700_v12 = vsub.s32 4, %v1898_v54 }
  0x40   : > { %1451 = vmatpush3.msk.msra.mxu1 %vm372_vm0, %v1839_v10  ;;  %1452 = vmatprep.mubr.msk.f32.mxu1 %vm1681_vm2, %v1680_v0  ;;  %v657_v63 = vrot.slane %v1913_v60, %v1901_v56  ;;  %v640_v7 = vrot.slane %v1913_v60, %v1904_v58  ;;  %v678_v9 = vrot.slane %v1918_v61, %v1921_v62  ;;  %vm712_vm8 = vcmp.lt.s32.totalorder %v1896_v53, 127 }
  0x41   : > { %1466 = vmatpush1.bf16.msra.mxu0 %v1465_v23  ;;  %v691_v11 = vrot.slane %v1913_v60, %v1908_v59  ;;  %v722_v17 = vrot.slane %v1918_v61, %v717_v3  ;;  %v705_v27 = vrot.slane %v1918_v61, %v700_v12  ;;  %vm729_vm9 = vcmp.lt.s32.totalorder %v1896_v53, 113 }
  0x42   : > { %1468 = vmatprep.subr.bf16.mxu0 %v1467_v26  ;;  %v674_v26 = vrot.slane %v1913_v60, %v1921_v62  ;;  %vm746_vm10 = vcmp.lt.s32.totalorder %v1896_v53, 112  ;;  %vm763_vm11 = vcmp.lt.s32.totalorder %v1896_v53, 111 }
  0x43   : > { %1453 = vmatmul.mubr.msk.f32.vlgmr.msra.gmra.mrb[2].mxu1 %vm368_vm1, %v448_v18 }
  0x44   : > { %845 = vmatprep.mubr.f32.mxu1 %v1680_v0 }
  0x45   : > { %1470 = vmatpush1.bf16.msra.mxu0 %v1469_v29 }
 0x112   : > { %v443_v30 = vpop.f32.mrb[0].mxu1 }
 0x113   : > { %v445_v31 = vpop.f32.mrb[1].mxu1  ;;  %v618_v34 = vrot.slane %v443_v30, 4 }
 0x114   : > { %v619_v35 = vrot.slane %v445_v31, 4 }
 0x116   : > { %v521_v32 = vpop.f32.mrb[2].mxu1 }
 0x117   : > { %v1454_v33 = vpop.f32.mrb[3].mxu1  ;;  %1436 = vmatmul.mubr.msk.f32.vlgmr.msra.gmra.mrb[0].mxu0 %vm541_vm3, %v521_v32 }
 0x118   : > { %1311 = vmatprep.mubr.f32.mxu0 %v1680_v0  ;;  %v661_v0 = vrot.slane %v1918_v61, %v1901_v56 }
 0x1ea   : > { %v611_v36 = vpop.f32.mrb[0].mxu0 }
 0x1eb   : > { %v1851_v37 = vsel %vm372_vm0, %v611_v36, %v618_v34  ;;  %v613_v38 = vpop.f32.mrb[1].mxu0 }
 0x1ec   : > { %v1854_v39 = vsel %vm372_vm0, %v613_v38, %v619_v35  ;;  %647 = vrot.lane.b32.xlu1 %v1851_v37, %s1682_s27  ;;  %628 = vrot.lane.b32.xlu0 %v1851_v37, %s1683_s29  ;;  %v718_v35 = vrot.slane %v1913_v60, %v717_v3  ;;  %v734_v38 = vsub.s32 6, %v1898_v54 }
 0x1f0   : > { %664 = vrot.lane.b32.xlu0 %v1851_v37, %s1684_s14  ;;  %649 = vrot.lane.b32.xlu1 %v1854_v39, %s1682_s27  ;;  %s351_s27 = sand.u32 1, %s1667_s10  }
 0x1f1   : > { %s1324_s25 = scalar_lea.sflag [#allocation4], %s351_s27 }
 0x1f4   : > { %681 = vrot.lane.b32.xlu0 %v1851_v37, %s1685_s23  ;;  %666 = vrot.lane.b32.xlu1 %v1854_v39, %s1684_s14  ;;  %s1447_s14 = sshll.u32 %s1765_s13, 7  ;;  %s1693_s13 = smov [#allocation5]  }
 0x1f5   : > { %s1613_s28 = sshll.u32 %s1693_s13, 4  ;;  %s1614_s28 = int_to_ptr.vmem [resolvable:$false] %s1613_s28 }
 0x1f6   : > { %s1615_s24 = scalar_lea.vmem %s1614_s28, 256 }
 0x1f8   : > { %683 = vrot.lane.b32.xlu1 %v1854_v39, %s1685_s23  ;;  %630 = vrot.lane.b32.xlu0 %v1854_v39, %s1683_s29  ;;  %s1427_s29 = sshll.u32 %s351_s27, 3 }
 0x1f9   : > { %s353_s23 = scalar_lea.vmem [#allocation5], %s1427_s29 }
 0x1fc   : > { %710 = vrot.lane.b32.xlu1 %v1854_v39, %s1686_s21  ;;  %708 = vrot.lane.b32.xlu0 %v1851_v37, %s1686_s21  ;;  %s1338_s21 = sshll.u32 %s353_s23, 4  ;;  %s2300_s21 = int_to_ptr.vmem [resolvable:$true] %s1338_s21 }
 0x1fd   : > { %s1609_s26 = scalar_lea.vmem %s2300_s21, 128  ;;  %p1616_p2 = scmp.lt.s32.totalorder %s2300_s21, %s1614_s28 }
 0x1fe   : > { %p1610_p6 = scmp.ne.s32.totalorder %s2300_s21, %s1609_s26  ;;  %p1617_p3 = scmp.lt.s32.totalorder %s1615_s24, %s1609_s26 }
 0x200   : > { %727 = vrot.lane.b32.xlu1 %v1854_v39, %s1687_s16  ;;  %725 = vrot.lane.b32.xlu0 %v1851_v37, %s1687_s16  ;;  %p1611_p10 = pnand %p1610_p6, %p2360_p9  ;;  %p1618_p4 = por %p1617_p3, %p1616_p2 }
 0x202   : > { %p1612_p12 = pneg %p1611_p10 }
 0x204   : > { %744 = vrot.lane.b32.xlu1 %v1854_v39, %s1689_s17  ;;  %742 = vrot.lane.b32.xlu0 %v1851_v37, %s1689_s17  ;;  %p1619_p7 = pnand %p1618_p4, %p1612_p12 }
 0x208   : > { %761 = vrot.lane.b32.xlu1 %v1854_v39, %s1690_s22  ;;  %759 = vrot.lane.b32.xlu0 %v1851_v37, %s1690_s22  ;;  %s2298_s22 = scalar_lea.hbm %s2349_s9, %s1447_s14 }
 0x20c   : > { %886 = vperm.xlu1 %1571, %v875_v41   ;;  %883 = vperm.xlu0 %1570, %v874_v42  }
 0x210   : > { %1572 = vset.pattern.permute.xlu1 %v1691_v44  ;;  %895 = vperm.xlu0 %1570, %v878_v43  }
 0x211   : > { %1058 = vperm.xlu1 %1572, %v874_v42  }
 0x214   : > { %1575 = vset.pattern.permute.xlu0 %v1691_v44 }
 0x215   : > { %1573 = vset.pattern.permute.xlu1 %v1688_v40  ;;  %1061 = vperm.xlu0 %1575, %v875_v41  }
 0x216   : > { %889 = vperm.xlu1 %1573, %v876_v45  }
 0x219   : > { %1064 = vperm.xlu0 %1575, %v876_v45   ;;  %v701_v45 = vrot.slane %v1913_v60, %v700_v12 }
 0x21a   : > { %892 = vperm.xlu1 %1573, %v877_v46  }
 0x21d   : > { %1073 = vperm.xlu0 %1575, %v879_v47  }
 0x21e   : > { %1574 = vset.pattern.permute.xlu1 %v1691_v44 }
 0x21f   : > { %1067 = vperm.xlu1 %1574, %v877_v46  }
 0x221   : > { %1076 = vperm.xlu0 %1575, %v880_v48  }
 0x223   : > { %1576 = vset.pattern.permute.xlu1 %v1688_v40 }
 0x224   : > { %898 = vperm.xlu1 %1576, %v879_v47  }
 0x228   : > { %1577 = vset.pattern.permute.xlu1 %v1691_v44 }
 0x229   : > { %1070 = vperm.xlu1 %1577, %v878_v43   ;;  %v751_v43 = vsub.s32 7, %v1898_v54 }
 0x22d   : > { %1578 = vset.pattern.permute.xlu1 %v1688_v40 }
 0x22e   : > { %901 = vperm.xlu1 %1578, %v880_v48   ;;  %v707_v48 = vmul.f32 %v705_v27, %v1854_v39 }
 0x232   : > { %904 = vperm.xlu1 %1578, %v881_v49  }
 0x236   : > { %1579 = vset.pattern.permute.xlu1 %v1691_v44 }
 0x237   : > { %1079 = vperm.xlu1 %1579, %v881_v49  }
 0x25e   : > { %v648_v51 = vpop.permute.xlu1 %647  ;;  %v629_v52 = vpop.permute.xlu0 %628 }
 0x262   : > { %v665_v55 = vpop.permute.xlu0 %664  ;;  %v650_v57 = vpop.permute.xlu1 %649 }
 0x263   : > { %v652_v4 = vsel %vm651_vm4, %v648_v51, %v650_v57  ;;  %v653_v5 = vsel %vm651_vm4, %v650_v57, %v648_v51  ;;  %v735_v51 = vrot.slane %v1913_v60, %v734_v38  ;;  %v756_v57 = vrot.slane %v1918_v61, %v751_v43 }
 0x264   : > { %v662_v13 = vmul.f32 %v657_v63, %v653_v5  ;;  %v663_v14 = vmul.f32 %v661_v0, %v652_v4  ;;  %v706_v0 = vmul.f32 %v701_v45, %v1851_v37  ;;  %v1438_v37 = vld [vmem:[%s2346_s6 + $0x18] ss:$0 sm:$0xff] }
 0x266   : > { %v682_v1 = vpop.permute.xlu0 %681  ;;  %v667_v2 = vpop.permute.xlu1 %666 }
 0x267   : > { %v669_v18 = vsel %vm668_vm5, %v665_v55, %v667_v2  ;;  %v670_v28 = vsel %vm668_vm5, %v667_v2, %v665_v55  ;;  %v752_v55 = vrot.slane %v1913_v60, %v751_v43 }
 0x268   : > { %v680_v29 = vmul.f32 %v678_v9, %v669_v18  ;;  %v679_v44 = vmul.f32 %v674_v26, %v670_v28  ;;  %v776_v18 = vld [vmem:[%s2345_s5] sm:$0x3] }
 0x26a   : > { %v684_v15 = vpop.permute.xlu1 %683  ;;  %v631_v16 = vpop.permute.xlu0 %630 }
 0x26b   : > { %v686_v19 = vsel %vm685_vm6, %v682_v1, %v684_v15  ;;  %v635_v20 = vsel %vm634_vm7, %v629_v52, %v631_v16  ;;  %v636_v21 = vsel %vm634_vm7, %v631_v16, %v629_v52  ;;  %v687_v22 = vsel %vm685_vm6, %v684_v15, %v682_v1  ;;  %v1437_v15 = vld [vmem:[%s2346_s6 + $0x10] ss:$0 sm:$0xff] }
 0x26c   : > { %v697_v23 = vmul.f32 %v695_v6, %v686_v19  ;;  %v645_v24 = vmul.f32 %v640_v7, %v636_v21  ;;  %v646_v25 = vmul.f32 %v644_v8, %v635_v20  ;;  %v696_v34 = vmul.f32 %v691_v11, %v687_v22 }
 0x26d   : > { %v739_v52 = vrot.slane %v1918_v61, %v734_v38  ;;  %v1692_v19 = vmov 1983009808  }
 0x26e   : > { %v1473_v30 = vpack.c.bf16 %v662_v13, %v645_v24  ;;  %v711_v31 = vpop.permute.xlu1 %710  ;;  %v709_v32 = vpop.permute.xlu0 %708  ;;  %v1471_v33 = vpack.c.bf16 %v663_v14, %v646_v25  ;;  %v1475_v42 = vpack.c.bf16 %v697_v23, %v680_v29  ;;  %v1477_v49 = vpack.c.bf16 %v696_v34, %v679_v44 }
 0x26f   : > { %v714_v36 = vsel %vm712_vm8, %v711_v31, %v709_v32  ;;  %v713_v40 = vsel %vm712_vm8, %v709_v32, %v711_v31  ;;  %v859_v20 = vunpack.c.l.s4 %v1692_v19 }
 0x270   : > { %v724_v41 = vmul.f32 %v722_v17, %v714_v36  ;;  %1472 = vmatprep.subr.bf16.mxu1 %v1471_v33  ;;  %v723_v50 = vmul.f32 %v718_v35, %v713_v40 }
 0x271   : > { %1474 = vmatpush1.bf16.msra.mxu1 %v1473_v30  ;;  %v860_v22 = vunpack.c.0.s8 %v859_v20  ;;  %v852_v30 = vld [vmem:[%s2347_s7] sm:$0xf] }
 0x272   : > { %v728_v46 = vpop.permute.xlu1 %727  ;;  %1476 = vmatprep.subr.bf16.mxu1 %v1475_v42  ;;  %v726_v47 = vpop.permute.xlu0 %725  ;;  %v1479_v63 = vpack.c.bf16 %v724_v41, %v707_v48  ;;  %v1481_v4 = vpack.c.bf16 %v723_v50, %v706_v0 }
 0x273   : > { %v730_v1 = vsel %vm729_vm9, %v726_v47, %v728_v46  ;;  %v731_v2 = vsel %vm729_vm9, %v728_v46, %v726_v47  ;;  %v863_v27 = vsub.s32 %v860_v22, %v1898_v54 }
 0x274   : > { %v740_v7 = vmul.f32 %v735_v51, %v730_v1  ;;  %v741_v8 = vmul.f32 %v739_v52, %v731_v2 }
 0x275   : > { %1478 = vmatpush1.bf16.msra.mxu1 %v1477_v49 }
 0x276   : > { %v745_v3 = vpop.permute.xlu1 %744  ;;  %v743_v39 = vpop.permute.xlu0 %742  ;;  %1480 = vmatprep.subr.bf16.mxu1 %v1479_v63 }
 0x277   : > { %v747_v5 = vsel %vm746_vm10, %v743_v39, %v745_v3  ;;  %v748_v6 = vsel %vm746_vm10, %v745_v3, %v743_v39 }
 0x278   : > { %v757_v9 = vmul.f32 %v752_v55, %v747_v5  ;;  %v758_v60 = vmul.f32 %v756_v57, %v748_v6 }
 0x279   : > { %1482 = vmatpush1.bf16.msra.mxu1 %v1481_v4 }
 0x27a   : > { %v1485_v61 = vpack.c.bf16 %v757_v9, %v740_v7  ;;  %v762_v11 = vpop.permute.xlu1 %761  ;;  %v760_v12 = vpop.permute.xlu0 %759  ;;  %v1483_v13 = vpack.c.bf16 %v758_v60, %v741_v8 }
 0x27b   : > { %v765_v14 = vsel %vm763_vm11, %v762_v11, %v760_v12  ;;  %v764_v16 = vsel %vm763_vm11, %v760_v12, %v762_v11 }
 0x27c   : > { %v775_v53 = vmul.f32 %v1438_v37, %v765_v14  ;;  %1484 = vmatprep.subr.bf16.mxu1 %v1483_v13  ;;  %v774_v17 = vmul.f32 %v1437_v15, %v764_v16 }
 0x27d   : > { %1486 = vmatpush1.bf16.msra.mxu1 %v1485_v61 }
 0x27e   : > { %797 = vmatprep.subr.mxu1 %v775_v53 }
 0x281   : > { %798 = vmatpush1.msra.mxu1 %v774_v17 }
 0x282   : > { %1439 = vmatmul.mubr.msk.f32.vlgmr.msra.gmra.mrb[4].mxu1 %vm777_vm12, %v776_v18 }
 0x28b   : > { %v1981_v21 = vpop.permute.xlu1 %886  ;;  %v884_v2 = vpop.permute.xlu0 %883 }
 0x28f   : > { %v896_v53 = vpop.permute.xlu0 %895 }
 0x290   : > { %v1984_v28 = vpop.permute.xlu1 %1058 }
 0x295   : > { %v1989_v33 = vpop.permute.xlu1 %889 }
 0x299   : > { %v1991_v38 = vpop.permute.xlu1 %892 }
 0x29e   : > { %v1068_v43 = vpop.permute.xlu1 %1067 }
 0x2a3   : > { %v899_v6 = vpop.permute.xlu1 %898 }
 0x2a8   : > { %v1071_v20 = vpop.permute.xlu1 %1070 }
 0x355   : > { %v847_v23 = vpop.f32.mrb[4].mxu1 }
 0x356   : > { %v853_v24 = vmul.f32 0.0625, %v847_v23  ;;  %v849_v25 = vpop.f32.mrb[5].mxu1 }
 0x357   : > { %v854_v26 = vmul.f32 0.0625, %v849_v25 }
 0x359   : > { %v857_v29 = vcombine.low %v853_v24, %v854_v26 }
 0x35b   : > { %v864_v31 = vrot.slane %v857_v29, %v863_v27 }
 0x35d   : > { %v866_v32 = vadd.f32 %v864_v31, %v852_v30 }
 0x35f   : > { %v867_v34 = vmul.f32 8.0, %v866_v32 }
 0x361   : > { %v868_v35 = vadd.f32 7.0, %v867_v34  ;;  %v1062_v34 = vpop.permute.xlu0 %1061 }
 0x363   : > { %v869_v36 = vmul.f32 0.5, %v868_v35 }
 0x365   : > { %v870_v40 = vfloor.f32 %v869_v36 }
 0x367   : > { %v1503_v41 = vtrunc.f32 %v870_v40  ;;  %v871_v42 = vsub.f32 %v869_v36, %v870_v40 }
 0x369   : > { %v1504_v54 = vcvt.f32.s32 %v1503_v41  ;;  %v872_v44 = vsub.f32 1.0, %v871_v42  ;;  %v1182_v1 = vrot.slane %v871_v42, %v1901_v56  ;;  %v1010_v8 = vrot.slane %v871_v42, %v1904_v58  ;;  %v902_v41 = vpop.permute.xlu1 %901 }
 0x36a   : > { %v1186_v60 = vrot.slane %v871_v42, %v1908_v59  ;;  %v1014_v12 = vrot.slane %v871_v42, %v1921_v62 }
 0x36b   : > { %v973_v45 = vadd.s32 1, %v1504_v54  ;;  %v1084_v46 = vrot.slane %v1504_v54, %v1901_v56  ;;  %v909_v47 = vrot.slane %v1504_v54, %v1904_v58  ;;  %v1088_v49 = vrot.slane %v1504_v54, %v1908_v59 }
 0x36c   : > { %v913_v50 = vrot.slane %v1504_v54, %v1921_v62  ;;  %v942_v57 = vrot.slane %v872_v44, %v1904_v58  ;;  %v1116_v0 = vrot.slane %v872_v44, %v1901_v56  ;;  %v1120_v39 = vrot.slane %v872_v44, %v1908_v59 }
 0x36d   : > { %v977_v48 = vrot.slane %v973_v45, %v1904_v58  ;;  %v981_v51 = vrot.slane %v973_v45, %v1921_v62  ;;  %v1150_v52 = vrot.slane %v973_v45, %v1901_v56  ;;  %v1154_v55 = vrot.slane %v973_v45, %v1908_v59 }
 0x36e   : > { %v2003_v63 = vrot.slane %v1084_v46, %v1901_v56  ;;  %v2018_v7 = vrot.slane %v909_v47, %v1904_v58  ;;  %v2022_v9 = vrot.slane %v1088_v49, %v1901_v56  ;;  %v2026_v37 = vrot.slane %v913_v50, %v1904_v58 }
 0x36f   : > { %v2008_v3 = vrot.slane %v977_v48, %v1904_v58  ;;  %v2012_v4 = vrot.slane %v1150_v52, %v1901_v56  ;;  %v2015_v5 = vrot.slane %v1154_v55, %v1901_v56  ;;  %v946_v61 = vrot.slane %v872_v44, %v1921_v62  ;;  %v1065_v55 = vpop.permute.xlu0 %1064 }
 0x370   : > { %v2030_v11 = vrot.slane %v981_v51, %v1904_v58  ;;  %v2034_v13 = vrot.slane %v942_v57, %v1904_v58  ;;  %v2037_v14 = vrot.slane %v1116_v0, %v1901_v56  ;;  %v2040_v15 = vrot.slane %v1182_v1, %v1901_v56 }
 0x371   : > { %vm1169_vm13 = vcmp.eq.s32.totalorder %v1068_v43, %v2012_v4  ;;  %v2044_v59 = vrot.slane %v1120_v39, %v1901_v56  ;;  %vm1103_vm14 = vcmp.eq.s32.totalorder %v1068_v43, %v2003_v63  ;;  %vm1170_vm15 = vcmp.eq.s32.totalorder %v1068_v43, %v2015_v5 }
 0x372   : > { %vm990_vm0 = vcmp.eq.s32.totalorder %v884_v2, %v2008_v3  ;;  %v2050_v62 = vrot.slane %v1010_v8, %v1904_v58  ;;  %v2053_v16 = vrot.slane %v1186_v60, %v1901_v56  ;;  %vm1104_vm1 = vcmp.eq.s32.totalorder %v1068_v43, %v2022_v9 }
 0x373   : > { %vm922_vm2 = vcmp.eq.s32.totalorder %v884_v2, %v2018_v7  ;;  %v2058_v17 = vrot.slane %v946_v61, %v1904_v58  ;;  %v2061_v18 = vrot.slane %v1014_v12, %v1904_v58  ;;  %v1203_v19 = vsel %vm1169_vm13, %v2040_v15, 0.0 }
 0x374   : > { %vm991_vm4 = vcmp.eq.s32.totalorder %v884_v2, %v2030_v11  ;;  %v1137_v22 = vsel %vm1103_vm14, %v2037_v14, 0.0  ;;  %v1204_v56 = vsel %vm1170_vm15, %v2053_v16, 0.0  ;;  %vm923_vm5 = vcmp.eq.s32.totalorder %v884_v2, %v2026_v37  ;;  %v905_v2 = vpop.permute.xlu1 %904 }
 0x375   : > { %v1025_v23 = vsel %vm990_vm0, %v2050_v62, 0.0  ;;  %v1138_v24 = vsel %vm1104_vm1, %v2044_v59, 0.0  ;;  %v957_v25 = vsel %vm922_vm2, %v2034_v13, 0.0  ;;  %vm932_vm6 = vcmp.eq.s32.totalorder %v899_v6, %v2018_v7 }
 0x376   : > { %vm1000_vm7 = vcmp.eq.s32.totalorder %v899_v6, %v2008_v3  ;;  %v2073_v58 = vadd.f32 %v1203_v19, %v1137_v22  ;;  %v1026_v26 = vsel %vm991_vm4, %v2061_v18, 0.0  ;;  %vm933_vm8 = vcmp.eq.s32.totalorder %v899_v6, %v2026_v37 }
 0x377   : > { %vm1001_vm9 = vcmp.eq.s32.totalorder %v899_v6, %v2030_v11  ;;  %v2078_v27 = vadd.f32 %v1204_v56, %v1138_v24  ;;  %v958_v29 = vsel %vm923_vm5, %v2058_v17, 0.0  ;;  %v2081_v30 = vadd.f32 %v1025_v23, %v957_v25  ;;  %v1074_v23 = vpop.permute.xlu0 %1073 }
 0x378   : > { %vm998_vm10 = vcmp.eq.s32.totalorder %v896_v53, %v2008_v3  ;;  %v967_v31 = vsel %vm932_vm6, %v2034_v13, 0.0  ;;  %v1035_v32 = vsel %vm1000_vm7, %v2050_v62, 0.0  ;;  %vm930_vm11 = vcmp.eq.s32.totalorder %v896_v53, %v2018_v7 }
 0x379   : > { %vm999_vm12 = vcmp.eq.s32.totalorder %v896_v53, %v2030_v11  ;;  %v2088_v35 = vadd.f32 %v1026_v26, %v958_v29  ;;  %v968_v36 = vsel %vm933_vm8, %v2058_v17, 0.0  ;;  %v1036_v40 = vsel %vm1001_vm9, %v2061_v18, 0.0  ;;  %v2152_v29 = vpop.permute.xlu1 %1079 }
 0x37a   : > { %vm1171_vm13 = vcmp.eq.s32.totalorder %v1071_v20, %v2012_v4  ;;  %vm931_vm14 = vcmp.eq.s32.totalorder %v896_v53, %v2026_v37  ;;  %v1033_v42 = vsel %vm998_vm10, %v2050_v62, 0.0  ;;  %vm1105_vm15 = vcmp.eq.s32.totalorder %v1071_v20, %v2003_v63 }
 0x37b   : > { %vm1172_vm0 = vcmp.eq.s32.totalorder %v1071_v20, %v2015_v5  ;;  %v2097_v54 = vadd.f32 %v1035_v32, %v967_v31  ;;  %v965_v43 = vsel %vm930_vm11, %v2034_v13, 0.0  ;;  %v1034_v44 = vsel %vm999_vm12, %v2061_v18, 0.0 }
 0x37c   : > { %vm1106_vm1 = vcmp.eq.s32.totalorder %v1071_v20, %v2022_v9  ;;  %v2102_v45 = vadd.f32 %v1036_v40, %v968_v36  ;;  %v1205_v46 = vsel %vm1171_vm13, %v2040_v15, 0.0  ;;  %vm1099_vm2 = vcmp.eq.s32.totalorder %v1062_v34, %v2003_v63 }
 0x37d   : > { %vm1165_vm4 = vcmp.eq.s32.totalorder %v1062_v34, %v2012_v4  ;;  %v966_v47 = vsel %vm931_vm14, %v2058_v17, 0.0  ;;  %v2108_v48 = vadd.f32 %v1033_v42, %v965_v43  ;;  %v1139_v49 = vsel %vm1105_vm15, %v2037_v14, 0.0 }
 0x37e   : > { %v1206_v50 = vsel %vm1172_vm0, %v2053_v16, 0.0  ;;  %v2112_v51 = vadd.f32 %v1034_v44, %v966_v47  ;;  %v1140_v52 = vsel %vm1106_vm1, %v2044_v59, 0.0  ;;  %vm1100_vm5 = vcmp.eq.s32.totalorder %v1062_v34, %v2022_v9 }
 0x37f   : > { %vm1166_vm6 = vcmp.eq.s32.totalorder %v1062_v34, %v2015_v5  ;;  %v2117_v57 = vadd.f32 %v1205_v46, %v1139_v49  ;;  %v1133_v0 = vsel %vm1099_vm2, %v2037_v14, 0.0  ;;  %v1199_v1 = vsel %vm1165_vm4, %v2040_v15, 0.0 }
 0x380   : > { %vm1003_vm7 = vcmp.eq.s32.totalorder %v902_v41, %v2030_v11  ;;  %v2122_v39 = vadd.f32 %v1206_v50, %v1140_v52  ;;  %vm934_vm8 = vcmp.eq.s32.totalorder %v902_v41, %v2018_v7  ;;  %vm935_vm9 = vcmp.eq.s32.totalorder %v902_v41, %v2026_v37  ;;  %v2184_v50 = vpop.permute.xlu0 %1076 }
 0x381   : > { %vm1167_vm10 = vcmp.eq.s32.totalorder %v1065_v55, %v2012_v4  ;;  %v1134_v6 = vsel %vm1100_vm5, %v2044_v59, 0.0  ;;  %v1200_v8 = vsel %vm1166_vm6, %v2053_v16, 0.0  ;;  %vm1002_vm11 = vcmp.eq.s32.totalorder %v902_v41, %v2008_v3 }
 0x382   : > { %vm1101_vm12 = vcmp.eq.s32.totalorder %v1065_v55, %v2003_v63  ;;  %v2131_v60 = vadd.f32 %v1199_v1, %v1133_v0  ;;  %v1038_v61 = vsel %vm1003_vm7, %v2061_v18, 0.0  ;;  %vm1102_vm13 = vcmp.eq.s32.totalorder %v1065_v55, %v2022_v9 }
 0x383   : > { %vm1168_vm14 = vcmp.eq.s32.totalorder %v1065_v55, %v2015_v5  ;;  %v2137_v12 = vsel %vm934_vm8, %v2034_v13, 0.0  ;;  %v970_v53 = vsel %vm935_vm9, %v2058_v17, 0.0  ;;  %v1201_v19 = vsel %vm1167_vm10, %v2040_v15, 0.0 }
 0x384   : > { %vm936_vm15 = vcmp.eq.s32.totalorder %v905_v2, %v2018_v7  ;;  %v1216_v20 = vadd.f32 %v1200_v8, %v1134_v6  ;;  %v2143_v22 = vsel %vm1002_vm11, %v2050_v62, 0.0  ;;  %v1135_v56 = vsel %vm1101_vm12, %v2037_v14, 0.0 }
 0x385   : > { %vm1005_vm0 = vcmp.eq.s32.totalorder %v905_v2, %v2030_v11  ;;  %v2147_v24 = vadd.f32 %v1038_v61, %v970_v53  ;;  %v1136_v25 = vsel %vm1102_vm13, %v2044_v59, 0.0  ;;  %v1202_v26 = vsel %vm1168_vm14, %v2053_v16, 0.0 }
 0x386   : > { %vm937_vm1 = vcmp.eq.s32.totalorder %v905_v2, %v2026_v37  ;;  %v2154_v31 = vadd.f32 %v1201_v19, %v1135_v56  ;;  %v2157_v32 = vsel %vm936_vm15, %v2034_v13, 0.0  ;;  %vm1173_vm2 = vcmp.eq.s32.totalorder %v1074_v23, %v2012_v4 }
 0x387   : > { %vm1174_vm4 = vcmp.eq.s32.totalorder %v1074_v23, %v2015_v5  ;;  %vm1004_vm5 = vcmp.eq.s32.totalorder %v905_v2, %v2008_v3  ;;  %v1040_v34 = vsel %vm1005_vm0, %v2061_v18, 0.0  ;;  %vm1107_vm6 = vcmp.eq.s32.totalorder %v1074_v23, %v2003_v63 }
 0x388   : > { %vm1108_vm7 = vcmp.eq.s32.totalorder %v1074_v23, %v2022_v9  ;;  %v2165_v36 = vadd.f32 %v1202_v26, %v1136_v25  ;;  %v972_v40 = vsel %vm937_vm1, %v2058_v17, 0.0  ;;  %vm1112_vm8 = vcmp.eq.s32.totalorder %v2152_v29, %v2022_v9 }
 0x389   : > { %vm1178_vm9 = vcmp.eq.s32.totalorder %v2152_v29, %v2015_v5  ;;  %v1207_v41 = vsel %vm1173_vm2, %v2040_v15, 0.0  ;;  %v1208_v42 = vsel %vm1174_vm4, %v2053_v16, 0.0  ;;  %vm1177_vm10 = vcmp.eq.s32.totalorder %v2152_v29, %v2012_v4 }
 0x38a   : > { %v1212_v43 = vsel %vm1178_vm9, %v2053_v16, 0.0  ;;  %v2178_v44 = vsel %vm1004_vm5, %v2050_v62, 0.0  ;;  %v2180_v46 = vadd.f32 %v1040_v34, %v972_v40  ;;  %v1141_v47 = vsel %vm1107_vm6, %v2037_v14, 0.0 }
 0x38b   : > { %v1142_v49 = vsel %vm1108_vm7, %v2044_v59, 0.0  ;;  %v1146_v52 = vsel %vm1112_vm8, %v2044_v59, 0.0  ;;  %vm1176_vm11 = vcmp.eq.s32.totalorder %v2184_v50, %v2015_v5  ;;  %vm925_vm12 = vcmp.eq.s32.totalorder %v1981_v21, %v2026_v37 }
 0x38c   : > { %vm993_vm13 = vcmp.eq.s32.totalorder %v1981_v21, %v2030_v11  ;;  %v2193_v55 = vadd.f32 %v1207_v41, %v1141_v47  ;;  %v1224_v0 = vadd.f32 %v1208_v42, %v1142_v49  ;;  %v2196_v1 = vsel %vm1177_vm10, %v2040_v15, 0.0 }
 0x38d   : > { %v2198_v2 = vadd.f32 %v1212_v43, %v1146_v52  ;;  %vm1110_vm14 = vcmp.eq.s32.totalorder %v2184_v50, %v2022_v9  ;;  %v960_v6 = vsel %vm925_vm12, %v2058_v17, 0.0  ;;  %v1028_v8 = vsel %vm993_vm13, %v2061_v18, 0.0 }
 0x38e   : > { %vm1098_vm15 = vcmp.eq.s32.totalorder %v1984_v28, %v2022_v9  ;;  %vm1164_vm0 = vcmp.eq.s32.totalorder %v1984_v28, %v2015_v5  ;;  %vm1175_vm1 = vcmp.eq.s32.totalorder %v2184_v50, %v2012_v4  ;;  %v1210_v61 = vsel %vm1176_vm11, %v2053_v16, 0.0 }
 0x38f   : > { %v1044_v53 = vadd.f32 %v1028_v8, %v960_v6  ;;  %v1132_v19 = vsel %vm1098_vm15, %v2044_v59, 0.0  ;;  %v1198_v56 = vsel %vm1164_vm0, %v2053_v16, 0.0  ;;  %vm1111_vm2 = vcmp.eq.s32.totalorder %v2152_v29, %v2003_v63 }
 0x390   : > { %v1214_v23 = vadd.f32 %v1198_v56, %v1132_v19  ;;  %vm924_vm4 = vcmp.eq.s32.totalorder %v1981_v21, %v2018_v7  ;;  %vm992_vm5 = vcmp.eq.s32.totalorder %v1981_v21, %v2008_v3  ;;  %vm1097_vm6 = vcmp.eq.s32.totalorder %v1984_v28, %v2003_v63 }
 0x391   : > { %vm1109_vm7 = vcmp.eq.s32.totalorder %v2184_v50, %v2003_v63  ;;  %v1232_v5 = vmul.f32 %v1216_v20, %v1044_v53  ;;  %v959_v25 = vsel %vm924_vm4, %v2034_v13, 0.0  ;;  %v1027_v16 = vsel %vm992_vm5, %v2050_v62, 0.0 }
 0x392   : > { %v1131_v26 = vsel %vm1097_vm6, %v2037_v14, 0.0  ;;  %v1230_v34 = vmul.f32 %v1214_v23, %v2088_v35  ;;  %v1043_v40 = vadd.f32 %v1027_v16, %v959_v25  ;;  %vm1163_vm8 = vcmp.eq.s32.totalorder %v1984_v28, %v2012_v4 }
 0x393   : > { %vm927_vm9 = vcmp.eq.s32.totalorder %v1989_v33, %v2026_v37  ;;  %v1197_v21 = vsel %vm1163_vm8, %v2040_v15, 0.0  ;;  %vm929_vm10 = vcmp.eq.s32.totalorder %v1991_v38, %v2026_v37  ;;  %vm995_vm11 = vcmp.eq.s32.totalorder %v1989_v33, %v2030_v11 }
 0x394   : > { %v962_v20 = vsel %vm927_vm9, %v2058_v17, 0.0  ;;  %v1487_v41 = vpack.c.bf16 %v1232_v5, %v1230_v34  ;;  %v1213_v42 = vadd.f32 %v1197_v21, %v1131_v26  ;;  %v1231_v35 = vmul.f32 %v2131_v60, %v1043_v40 }
 0x395   : > { %v964_v43 = vsel %vm929_vm10, %v2058_v17, 0.0  ;;  %vm997_vm12 = vcmp.eq.s32.totalorder %v1991_v38, %v2030_v11  ;;  %v1030_v28 = vsel %vm995_vm11, %v2061_v18, 0.0  ;;  %vm926_vm13 = vcmp.eq.s32.totalorder %v1989_v33, %v2018_v7 }
 0x396   : > { %vm928_vm15 = vcmp.eq.s32.totalorder %v1991_v38, %v2018_v7  ;;  %1488 = vmatprep.subr.bf16.mxu0 %v1487_v41  ;;  %v1229_v37 = vmul.f32 %v1213_v42, %v2081_v30  ;;  %v1032_v47 = vsel %vm997_vm12, %v2061_v18, 0.0  ;;  %v1046_v49 = vadd.f32 %v1030_v28, %v962_v20 }
 0x397   : > { %v961_v60 = vsel %vm926_vm13, %v2034_v13, 0.0  ;;  %v1048_v17 = vadd.f32 %v1032_v47, %v964_v43  ;;  %v963_v52 = vsel %vm928_vm15, %v2034_v13, 0.0  ;;  %vm994_vm0 = vcmp.eq.s32.totalorder %v1989_v33, %v2008_v3 }
 0x398   : > { %vm996_vm4 = vcmp.eq.s32.totalorder %v1991_v38, %v2008_v3  ;;  %v1489_v11 = vpack.c.bf16 %v1231_v35, %v1229_v37  ;;  %v1234_v7 = vmul.f32 %v2165_v36, %v1046_v49  ;;  %v1029_v6 = vsel %vm994_vm0, %v2050_v62, 0.0 }
 0x399   : > { %v1031_v30 = vsel %vm996_vm4, %v2050_v62, 0.0  ;;  %v1144_v18 = vsel %vm1110_vm14, %v2044_v59, 0.0  ;;  %v1236_v13 = vmul.f32 %v2078_v27, %v1048_v17  ;;  %v1045_v8 = vadd.f32 %v1029_v6, %v961_v60 }
 0x39a   : > { %v1047_v53 = vadd.f32 %v1031_v30, %v963_v52  ;;  %v1209_v33 = vsel %vm1175_vm1, %v2040_v15, 0.0  ;;  %v1226_v38 = vadd.f32 %v1210_v61, %v1144_v18  ;;  %1490 = vmatpush1.bf16.msra.mxu0 %v1489_v11  ;;  %v1238_v3 = vmul.f32 %v2122_v39, %v2112_v51 }
 0x39b   : > { %v1240_v62 = vmul.f32 %v1224_v0, %v2102_v45  ;;  %v1145_v9 = vsel %vm1111_vm2, %v2037_v14, 0.0  ;;  %v1491_v59 = vpack.c.bf16 %v1236_v13, %v1234_v7  ;;  %v1233_v27 = vmul.f32 %v2154_v31, %v1045_v8 }
 0x39c   : > { %v1235_v36 = vmul.f32 %v2073_v58, %v1047_v53  ;;  %v1053_v4 = vadd.f32 %v2143_v22, %v2137_v12  ;;  %v1055_v15 = vadd.f32 %v2178_v44, %v2157_v32  ;;  %v1227_v51 = vadd.f32 %v2196_v1, %v1145_v9 }
 0x39d   : > { %v1143_v45 = vsel %vm1109_vm7, %v2037_v14, 0.0  ;;  %1492 = vmatprep.subr.bf16.mxu0 %v1491_v59  ;;  %v1237_v31 = vmul.f32 %v2117_v57, %v2108_v48  ;;  %v1239_v58 = vmul.f32 %v2193_v55, %v2097_v54  ;;  %v1495_v12 = vpack.c.bf16 %v1240_v62, %v1238_v3 }
 0x39e   : > { %v1225_v39 = vadd.f32 %v1209_v33, %v1143_v45  ;;  %v1493_v29 = vpack.c.bf16 %v1235_v36, %v1233_v27  ;;  %v1242_v22 = vmul.f32 %v1226_v38, %v2147_v24  ;;  %v1244_v32 = vmul.f32 %v2198_v2, %v2180_v46 }
 0x39f   : > { %v1243_v63 = vmul.f32 %v1227_v51, %v1055_v15  ;;  %v1497_v44 = vpack.c.bf16 %v1239_v58, %v1237_v31 }
 0x3a0   : > { %1494 = vmatpush1.bf16.msra.mxu0 %v1493_v29  ;;  %v1241_v14 = vmul.f32 %v1225_v39, %v1053_v4  ;;  %v1499_v50 = vpack.c.bf16 %v1244_v32, %v1242_v22 }
 0x3a1   : > { %1496 = vmatprep.subr.bf16.mxu0 %v1495_v12 }
 0x3a2   : > { %v1501_v48 = vpack.c.bf16 %v1243_v63, %v1241_v14 }
 0x3a4   : > { %1498 = vmatpush1.bf16.msra.mxu0 %v1497_v44 }
 0x3a5   : > { %1500 = vmatprep.subr.bf16.mxu0 %v1499_v50 }
 0x3a8   : > { %1502 = vmatpush1.bf16.msra.mxu0 %v1501_v48 }
 0x3ab   : > { %1440 = vmatmul.mubr.msk.f32.vlgmr.msra.gmra.mrb[2].mxu0 %vm541_vm3, %v1839_v10 }
 0x47e   : > { %v1313_v54 = vpop.f32.mrb[2].mxu0 }
 0x47f   : > { %v1315_v57 = vpop.f32.mrb[3].mxu0 }
 0x480   : > { %v1320_v24 = vcombine.low %v1313_v54, %v1315_v57 }
 0x482   : > { %1322 = vst [vmem:[%s353_s23] sm:$0xff] %v1320_v24 }
 0x483   : > { %1622 = shalt.err (!%p1619_p7)
}
 0x484   : > { %s1623_s27 = scalar_lea.hbm %s2298_s22, 128  ;;  %s1627_s23 = scalar_lea.hbm %s2349_s9, 256 }
 0x485   : > { %p1624_p8 = scmp.ne.s32.totalorder %s2298_s22, %s1623_s27  ;;  %p1628_p1 = scmp.lt.u32.totalorder %s2298_s22, %s2349_s9 }
 0x486   : > { %p1629_p0 = scmp.lt.u32.totalorder %s1627_s23, %s1623_s27  ;;  %p1631_p6 = scmp.lt.u32.totalorder %s1623_s27, %s2298_s22 }
 0x487   : > { %p1625_p11 = pnand %p1624_p8, %p2360_p9 }
 0x488   : > { %p1630_p5 = por %p1629_p0, %p1628_p1 }
 0x489   : > { %p1626_p13 = pneg %p1625_p11 }
 0x48a   : > { %p1632_p10 = por %p1631_p6, %p1630_p5 }
 0x48c   : > { %p1633_p12 = pnand %p1632_p10, %p1626_p13 }
 0x48e   : > { %1636 = shalt.err (!%p1633_p12)
}
 0x48f   : > { %1509 = dma.vmem_to_hbm [thread:$0]  (%p2360_p9), %s2300_s21, 128, %s2298_s22, %s1324_s25  }
 0x490 PF: > { %p1521_p2 = scmp.ge.s32.totalorder %s1675_s12, 2  ;;  %s1350_s26 = sand.u32 1, %s1663_s30  }
 0x491   : > { %p2361_p3 = scmp.ne.s32.totalorder %s2354_s20, 0  ;;  %s1351_s13 = scalar_lea.sflag [#allocation4], %s1350_s26 }
 0x493   : > { %p1516_p4 = pnand %p1521_p2, %p2361_p3 }
 0x495   : > { %1658 = dma.done.wait (!%p1516_p4), %s1351_s13, 128  }
 0x496   : > { %1660 = vsyncadd (!%p1516_p4), %s1351_s13, 4294967168  ;;  %p20_p7 = scmp.ge.s32.totalorder %s1769_s15, 4   ;;  %s2362_s30 = smov %s1667_s10 }
 0x497   : > { %s2363_s10 = smov %s1671_s11  ;;  %s2364_s11 = smov %s1780_s18 }
 0x498   : > { %s2365_s12 = smov %s1769_s15  ;;  %22 = sbr.rel (!%p20_p7) target bundleno = 4 (0x4), region = 99 }
 0x49f   :  { %1356 = vsyncpa [#allocation3], 1 }
 0x4a0   :  { %1358 = vsyncpa [#allocation3 + $0x1], 1 }
 0x4a1   :  { %1359 = vsyncpa [#allocation4], 1 }
 0x4a2   :  { %1361 = vsyncpa [#allocation4 + $0x1], 1 }

</bundles_post_ra>
